<compile_context>
chip_gen: v5e
topology: v5e:2x2
jax: 0.10.0
libtpu: 0.0.40
codegen_flags: <defaults>
</compile_context>

<pallas_src>
import math

import jax
import jax.numpy as jnp
from jax.experimental import pallas as pl
from jax.experimental.pallas import tpu as pltpu


def _round_up(n: int, m: int) -> int:
    return ((n + m - 1) // m) * m


def _nonlinear_expert_kernel(x_ref, w1_ref, b1_ref, w2_ref, b2_ref, o_ref):
    """Fused MLP expert tile: out = tanh(x @ W1 + b1) @ W2 + b2.

    x_ref:  (TB, Ip)  matmul dtype (bf16 by default)
    w1_ref: (Ip, Hp)  matmul dtype   -- VMEM-resident across the grid
    b1_ref: (1,  Hp)  f32
    w2_ref: (Hp, Op)  matmul dtype   -- VMEM-resident across the grid
    b2_ref: (1,  Op)  f32
    o_ref:  (TB, Op)  f32            -- lane-dense (Op multiple of 128)
    """
    # First matmul on the MXU with f32 accumulation.
    h = jnp.dot(x_ref[...], w1_ref[...], preferred_element_type=jnp.float32)
    # f32 epilogue: bias add (VPU slot) + tanh (EUP slot) -- off the MXU path.
    h = jnp.tanh(h + b1_ref[...])
    # Second matmul; cast activations to the weight dtype for the MXU.
    out = jnp.dot(h.astype(w2_ref.dtype), w2_ref[...],
                  preferred_element_type=jnp.float32) + b2_ref[...]
    o_ref[...] = out.astype(o_ref.dtype)


def nonlinear_expert_forward(x, w1, b1, w2, b2, *,
                             matmul_dtype=jnp.bfloat16,
                             block_b: int = 128):
    """out = tanh(x @ W1 + b1) @ W2 + b2 (same semantics as the torch module).

    Args:
      x:  (B, I) float32 inputs.
      w1: (I, H) float32 first-layer weight (transposed vs torch's (H, I)).
      b1: (H,)   float32 first-layer bias.
      w2: (H, O) float32 second-layer weight (transposed vs torch's (O, H)).
      b2: (O,)   float32 second-layer bias.
      matmul_dtype: dtype used on the MXU (bf16 halves weight DMA bytes and
        doubles MXU throughput on v6e/v7x; accumulation stays f32).
      block_b: batch tile size (rows per grid step).

    Returns:
      (B, O) float32 outputs.
    """
    B, I = x.shape
    H = w1.shape[1]
    O = w2.shape[1]

    # ---- pad to TPU-friendly, lane-dense shapes ---------------------------
    TB = min(block_b, _round_up(B, 8))   # batch tile (sublane axis, >= 8)
    Bp = _round_up(B, TB)
    Ip = _round_up(I, 128)
    Hp = _round_up(H, 128)
    Op = _round_up(O, 128)

    x_p = jnp.pad(x, ((0, Bp - B), (0, Ip - I))).astype(matmul_dtype)
    w1_p = jnp.pad(w1, ((0, Ip - I), (0, Hp - H))).astype(matmul_dtype)
    w2_p = jnp.pad(w2, ((0, Hp - H), (0, Op - O))).astype(matmul_dtype)
    b1_p = jnp.pad(b1.astype(jnp.float32), (0, Hp - H)).reshape(1, Hp)
    b2_p = jnp.pad(b2.astype(jnp.float32), (0, Op - O)).reshape(1, Op)

    grid = (Bp // TB,)

    out_p = pl.pallas_call(
        _nonlinear_expert_kernel,
        out_shape=jax.ShapeDtypeStruct((Bp, Op), jnp.float32),
        grid=grid,
        in_specs=[
            pl.BlockSpec((TB, Ip), lambda i: (i, 0)),   # x tile, streamed over grid
            pl.BlockSpec((Ip, Hp), lambda i: (0, 0)),   # W1: fetched once, resident
            pl.BlockSpec((1, Hp), lambda i: (0, 0)),    # b1: resident
            pl.BlockSpec((Hp, Op), lambda i: (0, 0)),   # W2: fetched once, resident
            pl.BlockSpec((1, Op), lambda i: (0, 0)),    # b2: resident
        ],
        out_specs=pl.BlockSpec((TB, Op), lambda i: (i, 0)),  # lane-dense store
        compiler_params=pltpu.CompilerParams(
            dimension_semantics=("parallel",)),  # v7x: shard batch tiles over 2 TCs
    )(x_p, w1_p, b1_p, w2_p, b2_p)

    return out_p[:B, :O]


def _reference(x, w1, b1, w2, b2, matmul_dtype):
    """Pure-JAX reference with the same bf16-matmul / f32-epilogue recipe."""
    h = jnp.dot(x.astype(matmul_dtype), w1.astype(matmul_dtype),
                preferred_element_type=jnp.float32) + b1
    h = jnp.tanh(h)
    return jnp.dot(h.astype(matmul_dtype), w2.astype(matmul_dtype),
                   preferred_element_type=jnp.float32) + b2


def init_expert_params(key, input_dim, hidden_dim, output_dim):
    """Deterministic init matching torch.nn.Linear defaults:
    U(-1/sqrt(fan_in), 1/sqrt(fan_in)) for both weight and bias."""
    k1, k2, k3, k4 = jax.random.split(key, 4)
    bound1 = 1.0 / math.sqrt(input_dim)
    bound2 = 1.0 / math.sqrt(hidden_dim)
    w1 = jax.random.uniform(k1, (input_dim, hidden_dim), jnp.float32,
                            minval=-bound1, maxval=bound1)
    b1 = jax.random.uniform(k2, (hidden_dim,), jnp.float32,
                            minval=-bound1, maxval=bound1)
    w2 = jax.random.uniform(k3, (hidden_dim, output_dim), jnp.float32,
                            minval=-bound2, maxval=bound2)
    b2 = jax.random.uniform(k4, (output_dim,), jnp.float32,
                            minval=-bound2, maxval=bound2)
    return w1, b1, w2, b2


if __name__ == "__main__":
    # Expert dimensions consistent with the module: hidden = mean(in, out).
    batch = 2
    input_dim = 16
    output_dim = 8
    hidden_dim = (input_dim + output_dim) // 2  # 12

    key = jax.random.PRNGKey(0)
    kx, kp, kx2 = jax.random.split(key, 3)
    x = jax.random.normal(kx, (batch, input_dim), jnp.float32)
    w1, b1, w2, b2 = init_expert_params(kp, input_dim, hidden_dim, output_dim)

    # Small (module-sized) problem.
    out = jax.block_until_ready(nonlinear_expert_forward(x, w1, b1, w2, b2))
    assert out.shape == (batch, output_dim)
    ref_matched = _reference(x, w1, b1, w2, b2, jnp.bfloat16)
    ref_f32 = jnp.tanh(x @ w1 + b1) @ w2 + b2
    assert jnp.allclose(out, ref_matched, atol=5e-3, rtol=5e-3)
    assert jnp.allclose(out, ref_f32, atol=3e-2, rtol=3e-2)

    # Larger batch: exercises the batch grid (padding to 384 rows, 3 tiles of
    # 128) with the weights DMA'd once and kept VMEM-resident.
    big_batch = 300
    xb = jax.random.normal(kx2, (big_batch, input_dim), jnp.float32)
    outb = jax.block_until_ready(nonlinear_expert_forward(xb, w1, b1, w2, b2))
    assert outb.shape == (big_batch, output_dim)
    refb_matched = _reference(xb, w1, b1, w2, b2, jnp.bfloat16)
    refb_f32 = jnp.tanh(xb @ w1 + b1) @ w2 + b2
    assert jnp.allclose(outb, refb_matched, atol=5e-3, rtol=5e-3)
    assert jnp.allclose(outb, refb_f32, atol=3e-2, rtol=3e-2)

    print("KERNEL_OK")
</pallas_src>

<mosaic_0001>
module attributes {stable_mosaic.version = 11 : i64} {
  func.func @_nonlinear_expert_kernel(%arg0: i32, %arg1: memref<8x128xbf16, #tpu.memory_space<vmem>>, %arg2: memref<128x128xbf16, #tpu.memory_space<vmem>>, %arg3: memref<1x128xf32, #tpu.memory_space<vmem>>, %arg4: memref<128x128xbf16, #tpu.memory_space<vmem>>, %arg5: memref<1x128xf32, #tpu.memory_space<vmem>>, %arg6: memref<8x128xf32, #tpu.memory_space<vmem>>) attributes {dimension_semantics = [#tpu.dimension_semantics<parallel>], iteration_bounds = array<i64: 1>, scalar_prefetch = 0 : i64, scratch_operands = 0 : i64, tpu.core_type = #tpu.core_type<tc>, window_params = [{transform_indices = @transform_0, window_bounds = array<i64: 8, 128>}, {pipeline_mode = #tpu.pipeline_mode<synchronous>, transform_indices = @transform_1, window_bounds = array<i64: 128, 128>}, {pipeline_mode = #tpu.pipeline_mode<synchronous>, transform_indices = @transform_2, window_bounds = array<i64: 1, 128>}, {pipeline_mode = #tpu.pipeline_mode<synchronous>, transform_indices = @transform_3, window_bounds = array<i64: 128, 128>}, {pipeline_mode = #tpu.pipeline_mode<synchronous>, transform_indices = @transform_4, window_bounds = array<i64: 1, 128>}, {transform_indices = @transform_5, window_bounds = array<i64: 8, 128>}]} {
    %c0 = arith.constant 0 : index
    %c0_0 = arith.constant 0 : index
    %0 = vector.load %arg1[%c0, %c0_0] : memref<8x128xbf16, #tpu.memory_space<vmem>>, vector<8x128xbf16>
    %c0_1 = arith.constant 0 : index
    %c0_2 = arith.constant 0 : index
    %1 = vector.load %arg2[%c0_1, %c0_2] : memref<128x128xbf16, #tpu.memory_space<vmem>>, vector<128x128xbf16>
    %cst = arith.constant dense<0.000000e+00> : vector<8x128xf32>
    %2 = tpu.matmul %0, %1, %cst {dimension_numbers = #tpu.dot_dimension_numbers<[1], [0], [0], [1], [0, 0, 1, 1], [], []>} : vector<8x128xbf16>, vector<128x128xbf16>, vector<8x128xf32> -> vector<8x128xf32>
    %c0_3 = arith.constant 0 : index
    %c0_4 = arith.constant 0 : index
    %3 = vector.load %arg3[%c0_3, %c0_4] : memref<1x128xf32, #tpu.memory_space<vmem>>, vector<1x128xf32>
    %4 = vector.broadcast %3 : vector<1x128xf32> to vector<8x128xf32>
    %5 = arith.addf %2, %4 : vector<8x128xf32>
    %6 = math.tanh %5 : vector<8x128xf32>
    %7 = arith.truncf %6 : vector<8x128xf32> to vector<8x128xbf16>
    %c0_5 = arith.constant 0 : index
    %c0_6 = arith.constant 0 : index
    %8 = vector.load %arg4[%c0_5, %c0_6] : memref<128x128xbf16, #tpu.memory_space<vmem>>, vector<128x128xbf16>
    %cst_7 = arith.constant dense<0.000000e+00> : vector<8x128xf32>
    %9 = tpu.matmul %7, %8, %cst_7 {dimension_numbers = #tpu.dot_dimension_numbers<[1], [0], [0], [1], [0, 0, 1, 1], [], []>} : vector<8x128xbf16>, vector<128x128xbf16>, vector<8x128xf32> -> vector<8x128xf32>
    %c0_8 = arith.constant 0 : index
    %c0_9 = arith.constant 0 : index
    %10 = vector.load %arg5[%c0_8, %c0_9] : memref<1x128xf32, #tpu.memory_space<vmem>>, vector<1x128xf32>
    %11 = vector.broadcast %10 : vector<1x128xf32> to vector<8x128xf32>
    %12 = arith.addf %9, %11 : vector<8x128xf32>
    %c0_10 = arith.constant 0 : index
    %c0_11 = arith.constant 0 : index
    %13 = vector.load %arg6[%c0_10, %c0_11] : memref<8x128xf32, #tpu.memory_space<vmem>>, vector<8x128xf32>
    tpu.vector_store %arg6[%c0_10, %c0_11], %12 {strides = array<i32>} : memref<8x128xf32, #tpu.memory_space<vmem>>, vector<8x128xf32>,
    return
  }
  func.func @transform_0(%arg0: i32) -> (i32, i32) {
    %c0_i32 = arith.constant 0 : i32
    %c0_i32_0 = arith.constant 0 : i32
    return %arg0, %c0_i32 : i32, i32
  }
  func.func @transform_1(%arg0: i32) -> (i32, i32) {
    %c0_i32 = arith.constant 0 : i32
    %c0_i32_0 = arith.constant 0 : i32
    %c0_i32_1 = arith.constant 0 : i32
    return %c0_i32, %c0_i32_0 : i32, i32
  }
  func.func @transform_2(%arg0: i32) -> (i32, i32) {
    %c0_i32 = arith.constant 0 : i32
    %c0_i32_0 = arith.constant 0 : i32
    %c0_i32_1 = arith.constant 0 : i32
    return %c0_i32, %c0_i32_0 : i32, i32
  }
  func.func @transform_3(%arg0: i32) -> (i32, i32) {
    %c0_i32 = arith.constant 0 : i32
    %c0_i32_0 = arith.constant 0 : i32
    %c0_i32_1 = arith.constant 0 : i32
    return %c0_i32, %c0_i32_0 : i32, i32
  }
  func.func @transform_4(%arg0: i32) -> (i32, i32) {
    %c0_i32 = arith.constant 0 : i32
    %c0_i32_0 = arith.constant 0 : i32
    %c0_i32_1 = arith.constant 0 : i32
    return %c0_i32, %c0_i32_0 : i32, i32
  }
  func.func @transform_5(%arg0: i32) -> (i32, i32) {
    %c0_i32 = arith.constant 0 : i32
    %c0_i32_0 = arith.constant 0 : i32
    return %arg0, %c0_i32 : i32, i32
  }
}

</mosaic_0001>

<bundles_post_ra>
// kernel: tpu_custom_call.1
= control target key start
LH: loop header
LB: loop body
LE: loop exit
PB: predicated region body
PF: predicated region fallthrough
CT: control target
= control target key end

     0   :  { %10 = vsyncpa [#allocation3], 0  ;;  %s496_s0 = inlined_call_operand.hbm [shape: bf16[8,128], index: 0, kind: input, shape index: {}]   ;;  %s497_s1 = inlined_call_operand.hbm [shape: bf16[128,128], index: 1, kind: input, shape index: {}]   ;;  %s498_s2 = inlined_call_operand.vmem [shape: f32[1,128], index: 2, kind: input, shape index: {}]   ;;  %s499_s3 = inlined_call_operand.hbm [shape: bf16[128,128], index: 3, kind: input, shape index: {}]   ;;  %s500_s4 = inlined_call_operand.vmem [shape: f32[1,128], index: 4, kind: input, shape index: {}]   ;;  %s501_s5 = inlined_call_operand.hbm [shape: f32[8,128], index: 5, kind: output, shape index: {}]  }
   0x1   :  { %11 = vsyncpa [#allocation6], 0  ;;  %s28_s20 = sshll.u32 %s497_s1, 4  ;;  %s29_s20 = int_to_ptr.hbm [resolvable:$true] %s28_s20 }
   0x2   :  { %12 = vsyncpa [#allocation4], 0  ;;  %s442_s21 = smov [#allocation5]   ;;  %s18_s25 = sshll.u32 %s496_s0, 4  ;;  %s19_s25 = int_to_ptr.hbm [resolvable:$true] %s18_s25 }
   0x3   :  { %s30_s22 = sshll.u32 %s442_s21, 4  ;;  %s443_s26 = smov 64   ;;  %s31_s22 = int_to_ptr.vmem [resolvable:$true] %s30_s22 }
   0x4   :  { %s444_s27 = smov 4   ;;  %s445_s28 = smov [#allocation2]  }
   0x5   :  { %36 = dma.hbm_to_vmem [thread:$0]  %s29_s20, 1024, %s31_s22, [#allocation6], %s443_s26, %s443_s26, %s444_s27  }
   0x6   :  { %s20_s29 = sshll.u32 %s445_s28, 4  ;;  %s43_s7 = sshll.u32 %s499_s3, 4  ;;  %s21_s29 = int_to_ptr.vmem [resolvable:$true] %s20_s29  ;;  %s44_s7 = int_to_ptr.hbm [resolvable:$true] %s43_s7 }
   0x7   :  { %23 = dma.hbm_to_vmem [thread:$0]  %s19_s25, 64, %s21_s29, [#allocation3]  }
   0x8   :  { %s446_s1 = smov [#allocation7]  }
   0x9   :  { %s45_s8 = sshll.u32 %s446_s1, 4  ;;  %s46_s8 = int_to_ptr.vmem [resolvable:$true] %s45_s8 }
   0xa   :  { %51 = dma.hbm_to_vmem [thread:$0]  %s44_s7, 1024, %s46_s8, [#allocation6], %s443_s26, %s443_s26, %s444_s27  }
   0xb   :  { %436 = dma.done.wait [#allocation3], 64  }
   0xc   :  { %437 = vsyncadd [#allocation3], 4294967232 }
   0xd   :  { %438 = dma.done.wait [#allocation6], 2048  }
   0xe   :  { %439 = vsyncadd [#allocation6], 4294965248  ;;  %v321_v0 = vld [vmem:[#allocation5 + $0x38] sm:$0xff]  ;;  %v320_v1 = vld [vmem:[#allocation5 + $0x30] sm:$0xff]  ;;  %s447_s11 = smov [#allocation8]   ;;  %s239_s15 = sshll.u32 %s501_s5, 4  ;;  %s240_s15 = int_to_ptr.hbm [resolvable:$true] %s239_s15 }
   0xf   :  { %135 = vmatpush.bf16.msra.mxu0 %v321_v0  ;;  %v329_v2 = vld [vmem:[#allocation7 + $0x38] sm:$0xff]  ;;  %v328_v3 = vld [vmem:[#allocation7 + $0x30] sm:$0xff]  ;;  %v319_v4 = vld [vmem:[#allocation5 + $0x28] sm:$0xff]  ;;  %s237_s12 = sshll.u32 %s447_s11, 4  ;;  %s238_s12 = int_to_ptr.vmem [resolvable:$true] %s237_s12 }
  0x10   :  { %218 = vmatpush.bf16.msra.mxu1 %v329_v2  ;;  %v327_v5 = vld [vmem:[#allocation7 + $0x28] sm:$0xff]  ;;  %v318_v6 = vld [vmem:[#allocation5 + $0x20] sm:$0xff]  ;;  %v317_v8 = vld [vmem:[#allocation5 + $0x18] sm:$0xff] }
  0x11   :  { %v326_v7 = vld [vmem:[#allocation7 + $0x20] sm:$0xff]  ;;  %v325_v9 = vld [vmem:[#allocation7 + $0x18] sm:$0xff]  ;;  %v316_v10 = vld [vmem:[#allocation5 + $0x10] sm:$0xff] }
  0x12   :  { %v315_v11 = vld [vmem:[#allocation5 + $0x8] sm:$0xff]  ;;  %v314_v12 = vld [vmem:[#allocation5] sm:$0xff]  ;;  %v66_v13 = vld [vmem:[#allocation2] sm:$0xf] }
  0x13   :  { %136 = vmatpush.bf16.msra.mxu0 %v320_v1  ;;  %v324_v14 = vld [vmem:[#allocation7 + $0x10] sm:$0xff]  ;;  %v323_v15 = vld [vmem:[#allocation7 + $0x8] sm:$0xff]  ;;  %v322_v16 = vld [vmem:[#allocation7] sm:$0xff] }
  0x14   :  { %219 = vmatpush.bf16.msra.mxu1 %v328_v3  ;;  %v336_v17 = vld [vmem:[%s498_s2] ss:$0 sm:$0xff] }
  0x15   :  { %v337_v23 = vld [vmem:[%s500_s4] ss:$0 sm:$0xff] }
  0x17   :  { %137 = vmatpush.bf16.msra.mxu0 %v319_v4 }
  0x18   :  { %220 = vmatpush.bf16.msra.mxu1 %v327_v5 }
  0x1b   :  { %138 = vmatpush.bf16.msra.mxu0 %v318_v6 }
  0x1c   :  { %221 = vmatpush.bf16.msra.mxu1 %v326_v7 }
  0x1f   :  { %139 = vmatpush.bf16.msra.mxu0 %v317_v8 }
  0x20   :  { %222 = vmatpush.bf16.msra.mxu1 %v325_v9 }
  0x23   :  { %140 = vmatpush.bf16.msra.mxu0 %v316_v10 }
  0x24   :  { %223 = vmatpush.bf16.msra.mxu1 %v324_v14 }
  0x27   :  { %141 = vmatpush.bf16.msra.mxu0 %v315_v11 }
  0x28   :  { %224 = vmatpush.bf16.msra.mxu1 %v323_v15 }
  0x2b   :  { %142 = vmatpush.bf16.msra.mxu0 %v314_v12 }
  0x2c   :  { %225 = vmatpush.bf16.msra.mxu1 %v322_v16 }
  0x2e   :  { %143 = vmatmul.bf16.vlgmr.msra.gmra.mxu0 %v66_v13 }
  0xab   :  { %v144_v18 = vpop.f32.mrf.mxu0 }
  0xac   :  { %v145_v19 = vadd.f32 %v336_v17, %v144_v18 }
  0xae   :  { %338 = vtanh.f32 %v145_v19 }
  0xb3   :  { %v146_v20 = vpop.f32.mrf.mxu0 }
  0xb4   :  { %v339_v21 = vpop.eup %338 }
  0xb5   :  { %v149_v22 = vpack.c.bf16 %v339_v21, %v339_v21 }
  0xb7   :  { %226 = vmatmul.bf16.vlgmr.msra.gmra.mxu1 %v149_v22 }
 0x134   :  { %v227_v24 = vpop.f32.mrf.mxu1 }
 0x135   :  { %v228_v25 = vadd.f32 %v337_v23, %v227_v24 }
 0x137   :  { %231 = vst [vmem:[#allocation8] sm:$0xff] %v228_v25 }
 0x138   :  { %242 = dma.vmem_to_hbm [thread:$0]  %s238_s12, 128, %s240_s15, [#allocation4]  }
 0x13c   :  { %v229_v26 = vpop.f32.mrf.mxu1 }
 0x13d   :  { %440 = dma.done.wait [#allocation4], 128  }
 0x13e   :  { %441 = vsyncadd [#allocation4], 4294967168 }
 0x13f   :  { %247 = vsyncpa [#allocation3], 1 }
 0x140   :  { %248 = vsyncpa [#allocation6], 1 }
 0x141   :  { %249 = vsyncpa [#allocation4], 1 }

</bundles_post_ra>
